<compile_context>
chip_gen: v5e
topology: v5e:2x2
jax: 0.10.0
libtpu: 0.0.40
codegen_flags: <defaults>
</compile_context>

<pallas_src>
import jax
import jax.numpy as jnp
from jax.experimental import pallas as pl
from jax.experimental.pallas import tpu as pltpu


def _ou_mlp_kernel(lat_ref, act_ref, noi_ref,
                   w1l_ref, w1a_ref, w1n_ref, b1_ref,
                   w2_ref, b2_ref, o_ref):
    # Fused concat: cat([lat, act, noi]) @ w1
    #             == lat @ w1[:L] + act @ w1[L:L+A] + noi @ w1[L+A:]
    h = jnp.dot(lat_ref[...], w1l_ref[...], preferred_element_type=jnp.float32)
    h = h + jnp.dot(act_ref[...], w1a_ref[...], preferred_element_type=jnp.float32)
    h = h + jnp.dot(noi_ref[...], w1n_ref[...], preferred_element_type=jnp.float32)
    h = h + b1_ref[...]
    h = jnp.maximum(h, 0.0)                                        # ReLU (f32)
    out = jnp.dot(h, w2_ref[...], preferred_element_type=jnp.float32) + b2_ref[...]
    o_ref[...] = out.astype(o_ref.dtype)


def ou_transition_forward(latent, action, noise, params, *, block_b=1024):
    """Pallas forward pass of OrnsteinUhlenbeckTransitionModel.

    latent: [B, latent_dim], action: [B, action_dim], noise: [B, noise_dim]
    params: dict with w1 [L+A+N, H], b1 [H], w2 [H, L], b2 [L]
    returns: [B, latent_dim]
    """
    B, Ld = latent.shape
    Ad = action.shape[1]
    Nd = noise.shape[1]
    H = params["w1"].shape[1]
    L = params["w2"].shape[1]
    out_dtype = latent.dtype

    # Split w1 by input-feature rows once (tiny, constant-foldable under jit).
    # This fuses torch.cat into the kernel as three partial matmuls.
    w1 = params["w1"]
    w1_lat = w1[:Ld]
    w1_act = w1[Ld:Ld + Ad]
    w1_noi = w1[Ld + Ad:]
    b1 = params["b1"].reshape(1, H)
    w2 = params["w2"]
    b2 = params["b2"].reshape(1, L)

    # Tile only over batch.  block_b is a multiple of 8, so either tb == B
    # (full-array block) or tb % 8 == 0 — both satisfy the (8,128) rule since
    # feature dims are always full-extent blocks.
    tb = B if B <= block_b else block_b
    if B % tb != 0:
        pad = tb - (B % tb)
        latent = jnp.pad(latent, ((0, pad), (0, 0)))
        action = jnp.pad(action, ((0, pad), (0, 0)))
        noise = jnp.pad(noise, ((0, pad), (0, 0)))
    Bp = latent.shape[0]
    grid = (Bp // tb,)

    def batch_spec(d):
        return pl.BlockSpec((tb, d), lambda i: (i, 0))

    def const_spec(shape):
        # Same block for every grid step -> weights stay resident in VMEM.
        return pl.BlockSpec(shape, lambda i: (0, 0))

    out = pl.pallas_call(
        _ou_mlp_kernel,
        out_shape=jax.ShapeDtypeStruct((Bp, L), out_dtype),
        grid=grid,
        in_specs=[
            batch_spec(Ld),        # latent
            batch_spec(Ad),        # action
            batch_spec(Nd),        # noise
            const_spec((Ld, H)),   # w1 rows for latent
            const_spec((Ad, H)),   # w1 rows for action
            const_spec((Nd, H)),   # w1 rows for noise
            const_spec((1, H)),    # b1
            const_spec((H, L)),    # w2
            const_spec((1, L)),    # b2
        ],
        out_specs=batch_spec(L),
        compiler_params=pltpu.CompilerParams(
            dimension_semantics=("parallel",)),   # v7x: shard batch over 2 TCs
    )(latent, action, noise, w1_lat, w1_act, w1_noi, b1, w2, b2)

    if Bp != B:
        out = out[:B]
    return out


def init_params(key, latent_dim, action_dim, noise_dim, hidden_size):
    """Deterministic parameter init matching nn.Linear shapes (stored transposed:
    w is [in, out] so the kernel does x @ w)."""
    d_in = latent_dim + action_dim + noise_dim
    k1, k2, k3, k4 = jax.random.split(key, 4)
    s1 = 1.0 / jnp.sqrt(d_in)
    s2 = 1.0 / jnp.sqrt(hidden_size)
    return {
        "w1": jax.random.uniform(k1, (d_in, hidden_size), jnp.float32, -s1, s1),
        "b1": jax.random.uniform(k2, (hidden_size,), jnp.float32, -s1, s1),
        "w2": jax.random.uniform(k3, (hidden_size, latent_dim), jnp.float32, -s2, s2),
        "b2": jax.random.uniform(k4, (latent_dim,), jnp.float32, -s2, s2),
    }


if __name__ == "__main__":
    # Module hyperparameters (a, b, delta, shortrate, k, dt are stored but
    # unused in forward, so they don't affect the kernel).
    latent_dim, action_dim, noise_dim, hidden_size = 4, 2, 2, 16
    batch = 8

    key = jax.random.PRNGKey(0)
    kp, kl, ka, kn = jax.random.split(key, 4)

    params = init_params(kp, latent_dim, action_dim, noise_dim, hidden_size)
    latent = jax.random.normal(kl, (batch, latent_dim), jnp.float32)
    action = jax.random.normal(ka, (batch, action_dim), jnp.float32)
    noise = jax.random.normal(kn, (batch, noise_dim), jnp.float32)

    fwd = jax.jit(lambda l, a, n: ou_transition_forward(l, a, n, params))
    out = jax.block_until_ready(fwd(latent, action, noise))

    # Pure-JAX reference of the same math (with the original concat form).
    x = jnp.concatenate([latent, action, noise], axis=-1)
    ref = jnp.maximum(x @ params["w1"] + params["b1"], 0.0) @ params["w2"] + params["b2"]
    assert out.shape == (batch, latent_dim)
    assert jnp.allclose(out, ref, atol=1e-5, rtol=1e-5)

    print("KERNEL_OK")
</pallas_src>

<mosaic_0001>
module attributes {stable_mosaic.version = 11 : i64} {
  func.func @_ou_mlp_kernel(%arg0: i32, %arg1: memref<8x4xf32, #tpu.memory_space<vmem>>, %arg2: memref<8x2xf32, #tpu.memory_space<vmem>>, %arg3: memref<8x2xf32, #tpu.memory_space<vmem>>, %arg4: memref<4x16xf32, #tpu.memory_space<vmem>>, %arg5: memref<2x16xf32, #tpu.memory_space<vmem>>, %arg6: memref<2x16xf32, #tpu.memory_space<vmem>>, %arg7: memref<1x16xf32, #tpu.memory_space<vmem>>, %arg8: memref<16x4xf32, #tpu.memory_space<vmem>>, %arg9: memref<1x4xf32, #tpu.memory_space<vmem>>, %arg10: memref<8x4xf32, #tpu.memory_space<vmem>>) attributes {dimension_semantics = [#tpu.dimension_semantics<parallel>], iteration_bounds = array<i64: 1>, scalar_prefetch = 0 : i64, scratch_operands = 0 : i64, tpu.core_type = #tpu.core_type<tc>, window_params = [{transform_indices = @transform_0, window_bounds = array<i64: 8, 4>}, {transform_indices = @transform_1, window_bounds = array<i64: 8, 2>}, {transform_indices = @transform_2, window_bounds = array<i64: 8, 2>}, {pipeline_mode = #tpu.pipeline_mode<synchronous>, transform_indices = @transform_3, window_bounds = array<i64: 4, 16>}, {pipeline_mode = #tpu.pipeline_mode<synchronous>, transform_indices = @transform_4, window_bounds = array<i64: 2, 16>}, {pipeline_mode = #tpu.pipeline_mode<synchronous>, transform_indices = @transform_5, window_bounds = array<i64: 2, 16>}, {pipeline_mode = #tpu.pipeline_mode<synchronous>, transform_indices = @transform_6, window_bounds = array<i64: 1, 16>}, {pipeline_mode = #tpu.pipeline_mode<synchronous>, transform_indices = @transform_7, window_bounds = array<i64: 16, 4>}, {pipeline_mode = #tpu.pipeline_mode<synchronous>, transform_indices = @transform_8, window_bounds = array<i64: 1, 4>}, {transform_indices = @transform_9, window_bounds = array<i64: 8, 4>}]} {
    %c0 = arith.constant 0 : index
    %c0_0 = arith.constant 0 : index
    %0 = vector.load %arg1[%c0, %c0_0] : memref<8x4xf32, #tpu.memory_space<vmem>>, vector<8x4xf32>
    %c0_1 = arith.constant 0 : index
    %c0_2 = arith.constant 0 : index
    %1 = vector.load %arg4[%c0_1, %c0_2] : memref<4x16xf32, #tpu.memory_space<vmem>>, vector<4x16xf32>
    %cst = arith.constant dense<0.000000e+00> : vector<8x16xf32>
    %2 = tpu.matmul %0, %1, %cst {dimension_numbers = #tpu.dot_dimension_numbers<[1], [0], [0], [1], [0, 0, 1, 1], [], []>} : vector<8x4xf32>, vector<4x16xf32>, vector<8x16xf32> -> vector<8x16xf32>
    %c0_3 = arith.constant 0 : index
    %c0_4 = arith.constant 0 : index
    %3 = vector.load %arg2[%c0_3, %c0_4] : memref<8x2xf32, #tpu.memory_space<vmem>>, vector<8x2xf32>
    %c0_5 = arith.constant 0 : index
    %c0_6 = arith.constant 0 : index
    %4 = vector.load %arg5[%c0_5, %c0_6] : memref<2x16xf32, #tpu.memory_space<vmem>>, vector<2x16xf32>
    %cst_7 = arith.constant dense<0.000000e+00> : vector<8x16xf32>
    %5 = tpu.matmul %3, %4, %cst_7 {dimension_numbers = #tpu.dot_dimension_numbers<[1], [0], [0], [1], [0, 0, 1, 1], [], []>} : vector<8x2xf32>, vector<2x16xf32>, vector<8x16xf32> -> vector<8x16xf32>
    %6 = arith.addf %2, %5 : vector<8x16xf32>
    %c0_8 = arith.constant 0 : index
    %c0_9 = arith.constant 0 : index
    %7 = vector.load %arg3[%c0_8, %c0_9] : memref<8x2xf32, #tpu.memory_space<vmem>>, vector<8x2xf32>
    %c0_10 = arith.constant 0 : index
    %c0_11 = arith.constant 0 : index
    %8 = vector.load %arg6[%c0_10, %c0_11] : memref<2x16xf32, #tpu.memory_space<vmem>>, vector<2x16xf32>
    %cst_12 = arith.constant dense<0.000000e+00> : vector<8x16xf32>
    %9 = tpu.matmul %7, %8, %cst_12 {dimension_numbers = #tpu.dot_dimension_numbers<[1], [0], [0], [1], [0, 0, 1, 1], [], []>} : vector<8x2xf32>, vector<2x16xf32>, vector<8x16xf32> -> vector<8x16xf32>
    %10 = arith.addf %6, %9 : vector<8x16xf32>
    %c0_13 = arith.constant 0 : index
    %c0_14 = arith.constant 0 : index
    %11 = vector.load %arg7[%c0_13, %c0_14] : memref<1x16xf32, #tpu.memory_space<vmem>>, vector<1x16xf32>
    %12 = vector.broadcast %11 : vector<1x16xf32> to vector<8x16xf32>
    %13 = arith.addf %10, %12 : vector<8x16xf32>
    %cst_15 = arith.constant 0.000000e+00 : f32
    %14 = vector.broadcast %cst_15 : f32 to vector<8x16xf32>
    %15 = arith.maximumf %13, %14 : vector<8x16xf32>
    %c0_16 = arith.constant 0 : index
    %c0_17 = arith.constant 0 : index
    %16 = vector.load %arg8[%c0_16, %c0_17] : memref<16x4xf32, #tpu.memory_space<vmem>>, vector<16x4xf32>
    %cst_18 = arith.constant dense<0.000000e+00> : vector<8x4xf32>
    %17 = tpu.matmul %15, %16, %cst_18 {dimension_numbers = #tpu.dot_dimension_numbers<[1], [0], [0], [1], [0, 0, 1, 1], [], []>} : vector<8x16xf32>, vector<16x4xf32>, vector<8x4xf32> -> vector<8x4xf32>
    %c0_19 = arith.constant 0 : index
    %c0_20 = arith.constant 0 : index
    %18 = vector.load %arg9[%c0_19, %c0_20] : memref<1x4xf32, #tpu.memory_space<vmem>>, vector<1x4xf32>
    %19 = vector.broadcast %18 : vector<1x4xf32> to vector<8x4xf32>
    %20 = arith.addf %17, %19 : vector<8x4xf32>
    %c0_21 = arith.constant 0 : index
    %c0_22 = arith.constant 0 : index
    %21 = vector.load %arg10[%c0_21, %c0_22] : memref<8x4xf32, #tpu.memory_space<vmem>>, vector<8x4xf32>
    tpu.vector_store %arg10[%c0_21, %c0_22], %20 {strides = array<i32>} : memref<8x4xf32, #tpu.memory_space<vmem>>, vector<8x4xf32>,
    return
  }
  func.func @transform_0(%arg0: i32) -> (i32, i32) {
    %c0_i32 = arith.constant 0 : i32
    %c0_i32_0 = arith.constant 0 : i32
    return %arg0, %c0_i32 : i32, i32
  }
  func.func @transform_1(%arg0: i32) -> (i32, i32) {
    %c0_i32 = arith.constant 0 : i32
    %c0_i32_0 = arith.constant 0 : i32
    return %arg0, %c0_i32 : i32, i32
  }
  func.func @transform_2(%arg0: i32) -> (i32, i32) {
    %c0_i32 = arith.constant 0 : i32
    %c0_i32_0 = arith.constant 0 : i32
    return %arg0, %c0_i32 : i32, i32
  }
  func.func @transform_3(%arg0: i32) -> (i32, i32) {
    %c0_i32 = arith.constant 0 : i32
    %c0_i32_0 = arith.constant 0 : i32
    %c0_i32_1 = arith.constant 0 : i32
    return %c0_i32, %c0_i32_0 : i32, i32
  }
  func.func @transform_4(%arg0: i32) -> (i32, i32) {
    %c0_i32 = arith.constant 0 : i32
    %c0_i32_0 = arith.constant 0 : i32
    %c0_i32_1 = arith.constant 0 : i32
    return %c0_i32, %c0_i32_0 : i32, i32
  }
  func.func @transform_5(%arg0: i32) -> (i32, i32) {
    %c0_i32 = arith.constant 0 : i32
    %c0_i32_0 = arith.constant 0 : i32
    %c0_i32_1 = arith.constant 0 : i32
    return %c0_i32, %c0_i32_0 : i32, i32
  }
  func.func @transform_6(%arg0: i32) -> (i32, i32) {
    %c0_i32 = arith.constant 0 : i32
    %c0_i32_0 = arith.constant 0 : i32
    %c0_i32_1 = arith.constant 0 : i32
    return %c0_i32, %c0_i32_0 : i32, i32
  }
  func.func @transform_7(%arg0: i32) -> (i32, i32) {
    %c0_i32 = arith.constant 0 : i32
    %c0_i32_0 = arith.constant 0 : i32
    %c0_i32_1 = arith.constant 0 : i32
    return %c0_i32, %c0_i32_0 : i32, i32
  }
  func.func @transform_8(%arg0: i32) -> (i32, i32) {
    %c0_i32 = arith.constant 0 : i32
    %c0_i32_0 = arith.constant 0 : i32
    %c0_i32_1 = arith.constant 0 : i32
    return %c0_i32, %c0_i32_0 : i32, i32
  }
  func.func @transform_9(%arg0: i32) -> (i32, i32) {
    %c0_i32 = arith.constant 0 : i32
    %c0_i32_0 = arith.constant 0 : i32
    return %arg0, %c0_i32 : i32, i32
  }
}

</mosaic_0001>

<bundles_post_ra>
// kernel: _lambda_.1
= control target key start
LH: loop header
LB: loop body
LE: loop exit
PB: predicated region body
PF: predicated region fallthrough
CT: control target
= control target key end

     0   :  { %vm40_vm0 = vcmask 1041408   ;;  %vm36_vm1 = vcmask 15360   ;;  %vm68_vm2 = vcmask 1043456   ;;  %vm64_vm3 = vcmask 31744   ;;  %s258_s5 = inlined_call_operand.vmem [shape: f32[2,16], index: 5, kind: input, shape index: {}]   ;;  %s259_s2 = inlined_call_operand.vmem [shape: f32[8,2], index: 2, kind: input, shape index: {}]   ;;  %s260_s4 = inlined_call_operand.vmem [shape: f32[2,16], index: 4, kind: input, shape index: {}]   ;;  %s261_s3 = inlined_call_operand.vmem [shape: f32[4,16], index: 3, kind: input, shape index: {}]   ;;  %s262_s1 = inlined_call_operand.vmem [shape: f32[8,2], index: 1, kind: input, shape index: {}]   ;;  %s263_s0 = inlined_call_operand.vmem [shape: f32[8,4], index: 0, kind: input, shape index: {}]   ;;  %s264_s6 = inlined_call_operand.vmem [shape: f32[1,16], index: 6, kind: input, shape index: {}]   ;;  %s265_s8 = inlined_call_operand.vmem [shape: f32[1,4], index: 8, kind: input, shape index: {}]   ;;  %s266_s7 = inlined_call_operand.vmem [shape: f32[16,4], index: 7, kind: input, shape index: {}]   ;;  %s267_s9 = inlined_call_operand.vmem [shape: f32[8,4], index: 9, kind: output, shape index: {}]  }
   0x1   :  { %v93_v0 = vld [vmem:[%s258_s5] sm:$0x3]  ;;  %v128_v6 = vld [vmem:[%s266_s7 + $0x8] sm:$0xff]  ;;  %vm133_vm4 = vcmask 130048  }
   0x2   :  { %v92_v1 = vld [vmem:[%s259_s2] sm:$0xff]  ;;  %166 = vmatpush.msk.msra.mxu2 %vm40_vm0, %v93_v0  ;;  %151 = vmatpush.msra.mxu3 %v128_v6 }
   0x3   :  { %v35_v2 = vld [vmem:[%s260_s4] sm:$0x3]  ;;  %167 = vmatmul.msk.f32.vlgmr.msra.gmra.mxu2 %vm36_vm1, %v92_v1 }
   0x4   :  { %162 = vmatpush.msk.msra.mxu0 %vm40_vm0, %v35_v2  ;;  %v33_v3 = vld [vmem:[%s261_s3] sm:$0xf] }
   0x5   :  { %v34_v4 = vld [vmem:[%s262_s1] sm:$0xff]  ;;  %164 = vmatpush.msk.msra.mxu1 %vm68_vm2, %v33_v3 }
   0x6   :  { %v32_v5 = vld [vmem:[%s263_s0] sm:$0xff]  ;;  %163 = vmatmul.msk.f32.vlgmr.msra.gmra.mxu0 %vm36_vm1, %v34_v4 }
   0x7   :  { %165 = vmatmul.msk.f32.vlgmr.msra.gmra.mxu1 %vm64_vm3, %v32_v5  ;;  %v127_v7 = vld [vmem:[%s266_s7] sm:$0xff] }
   0x8   :  { %152 = vmatpush.msra.mxu3 %v127_v7  ;;  %v169_v11 = vld [vmem:[%s264_s6] ss:$0 sm:$0xff] }
   0x9   :  { %v170_v16 = vld [vmem:[%s265_s8] ss:$0 sm:$0xff] }
  0x83   :  { %v61_v8 = vpop.f32.mrf.mxu0 }
  0x84   :  { %v89_v9 = vpop.f32.mrf.mxu1 }
  0x85   :  { %v90_v10 = vadd.f32 %v89_v9, %v61_v8 }
  0x86   :  { %v117_v12 = vpop.f32.mrf.mxu2 }
  0x87   :  { %v120_v13 = vadd.f32 %v117_v12, %v90_v10 }
  0x89   :  { %v125_v14 = vadd.f32 %v169_v11, %v120_v13 }
  0x8b   :  { %v126_v15 = vmax.f32 %v125_v14, 0.0 }
  0x8d   :  { %168 = vmatmul.msk.f32.vlgmr.msra.gmra.mxu3 %vm133_vm4, %v126_v15 }
 0x110   :  { %v154_v17 = vpop.f32.mrf.mxu3 }
 0x111   :  { %v155_v18 = vadd.f32 %v170_v16, %v154_v17 }
 0x113   :  { %157 = vst.msk [vmem:[%s267_s9] sm:$0xff] %vm64_vm3, %v155_v18 }

</bundles_post_ra>
